<compile_context>
chip_gen: v5e
topology: v5e:2x2
jax: 0.10.0
libtpu: 0.0.40
codegen_flags: <defaults>
</compile_context>

<pallas_src>
import jax
import jax.numpy as jnp
from jax import lax
from jax.experimental import pallas as pl
from jax.experimental.pallas import tpu as pltpu


def _pool_kernel(cls_ref, ph_ref, wstk_ref, bcomb_ref, wcls_ref, bcls_ref,
                 out_ref, obuf_ref):
    # cls_ref:   (blk_b, 1, C)              cls tokens (compute dtype)
    # ph_ref:    (blk_b, 4, Ho+1, Wo+1, C)  stride-2 parity phases of the padded tokens
    # wstk_ref:  (9*C, 2C)                  depthwise folded into pointwise, tap-stacked
    # bcomb_ref: (1, 2C)  f32               b_dw @ W_pw + b_pw
    # wcls_ref:  (C, 2C)                    cls Linear weight (transposed)
    # bcls_ref:  (1, 2C)  f32
    # out_ref:   (blk_b, 1+Ho*Wo, 2C)       final layout: row 0 = cls, rows 1.. = tokens
    # obuf_ref:  (blk_b, R, 2C) scratch     staging so HBM stores stay aligned/full-block
    blk_b = ph_ref.shape[0]
    Ho = ph_ref.shape[2] - 1
    Wo = ph_ref.shape[3] - 1
    C = ph_ref.shape[4]
    C2 = wstk_ref.shape[1]
    P = Ho * Wo

    # ---- cls token path: (blk_b, C) @ (C, 2C) on the MXU ----
    cls_tok = cls_ref[...].reshape(blk_b, C)
    cls_out = jnp.dot(cls_tok, wcls_ref[...], preferred_element_type=jnp.float32)
    cls_out = cls_out + bcls_ref[...]

    # ---- spatial tokens: 3x3/stride-2 depthwise + 1x1 pointwise as ONE stacked-K
    # matmul.  Lane block t of the stacked operand holds tap (ky, kx), t = ky*3 + kx,
    # matching the row blocks of wstk_ref.  Taps are contiguous slices of the phases.
    taps = []
    for ky in range(3):
        for kx in range(3):
            phase = (ky % 2) * 2 + (kx % 2)      # parity phase holding this tap
            r0 = ky // 2                         # row offset inside the phase
            c0 = kx // 2                         # col offset inside the phase
            tap = ph_ref[:, phase:phase + 1, r0:r0 + Ho, c0:c0 + Wo, :]
            taps.append(tap.reshape(blk_b * P, C))    # rows ordered (b, h, w)
    xstk = jnp.concatenate(taps, axis=-1)             # (blk_b*P, 9C)
    acc = jnp.dot(xstk, wstk_ref[...], preferred_element_type=jnp.float32)
    acc = acc + bcomb_ref[...]                        # single fused bias add (f32)

    # ---- assemble the final row order [cls, tokens...]: both staging stores and the
    # unaligned window read are VMEM-internal; the HBM store is one aligned full block.
    obuf_ref[:, 8:8 + P, :] = acc.reshape(blk_b, P, C2).astype(obuf_ref.dtype)
    obuf_ref[:, 7:8, :] = cls_out.reshape(blk_b, 1, C2).astype(obuf_ref.dtype)
    out_ref[...] = obuf_ref[:, 7:8 + P, :]


def pool_forward(x, w_dw, b_dw, w_pw, b_pw, w_cls, b_cls, *,
                 blk_b=None, compute_dtype=jnp.bfloat16):
    """x: (B, 1 + H*W, C).  Returns (B, 1 + Ho*Wo, 2C) with Ho = Wo = (H-1)//2 + 1."""
    B, N, C = x.shape
    H = int(round((N - 1) ** 0.5))
    assert H * H == N - 1, "token count must be a perfect square (H == W assumed)"
    W = H
    Ho = (H - 1) // 2 + 1
    Wo = (W - 1) // 2 + 1
    P = Ho * Wo
    C2 = 2 * C
    R = 8 + ((P + 7) // 8) * 8        # staging rows: [7] = cls, [8:8+P] = tokens
    out_dtype = x.dtype
    cbytes = jnp.dtype(compute_dtype).itemsize
    obytes = jnp.dtype(out_dtype).itemsize

    # ---- batch block: prefer >= 8 grid steps (even v7x megacore split, >= 4 steps per
    # core for pipelining); cap per-step VMEM so the largest block stays v7x-safe. ----
    if blk_b is None:
        def footprint(d):
            act = 2 * d * 4 * (Ho + 1) * (Wo + 1) * C * cbytes    # phases (double-buffered)
            out_b = 2 * d * (1 + P) * C2 * obytes                 # output (double-buffered)
            stage = d * R * C2 * obytes                           # staging scratch
            xstk = d * P * 9 * C * cbytes                         # stacked-K operand
            accf = d * P * C2 * 4                                 # f32 matmul result
            return act + out_b + stage + xstk + accf
        divisors = [d for d in range(1, B + 1) if B % d == 0]
        blk_b = 1
        for min_steps in (8, 4, 2, 1):
            cands = [d for d in divisors
                     if B // d >= min_steps and footprint(d) <= 24 * 1024 * 1024]
            if cands:
                blk_b = max(cands)
                break
    assert B % blk_b == 0

    # ---- activations: pad, stride-2 parity split, cast (one fused XLA producer) ----
    cls_tok = x[:, :1, :].astype(compute_dtype)                  # (B, 1, C)
    tokens = x[:, 1:, :].reshape(B, H, W, C)                     # NHWC
    xp = jnp.pad(tokens, ((0, 0), (1, 1), (1, 1), (0, 0)))       # conv zero pad = 1

    def phase(pr, pc):
        t = xp[:, pr::2, pc::2, :][:, :Ho + 1, :Wo + 1, :]
        ph_h, ph_w = t.shape[1], t.shape[2]
        if ph_h < Ho + 1 or ph_w < Wo + 1:
            t = jnp.pad(t, ((0, 0), (0, Ho + 1 - ph_h), (0, Wo + 1 - ph_w), (0, 0)))
        return t

    phases = jnp.stack([phase(0, 0), phase(0, 1), phase(1, 0), phase(1, 1)],
                       axis=1).astype(compute_dtype)             # (B, 4, Ho+1, Wo+1, C)

    # ---- parameters: fold depthwise into pointwise, stack the 9 taps along K ----
    wdw_taps = w_dw.reshape(C, 9).T                              # (9, C), tap t = ky*3+kx
    wpw = w_pw.reshape(C2, C).T                                  # (C, 2C)
    w_stk = (wdw_taps[:, :, None] * wpw[None, :, :]).reshape(9 * C, C2)
    b_comb = (b_dw.reshape(1, C) @ wpw + b_pw.reshape(1, C2)).astype(jnp.float32)
    w_stk = w_stk.astype(compute_dtype)
    wcls_k = w_cls.T.astype(compute_dtype)                       # (C, 2C)
    bcls_k = b_cls.reshape(1, C2).astype(jnp.float32)

    out = pl.pallas_call(
        _pool_kernel,
        out_shape=jax.ShapeDtypeStruct((B, 1 + P, C2), out_dtype),
        grid_spec=pltpu.PrefetchScalarGridSpec(
            num_scalar_prefetch=0,
            grid=(B // blk_b,),
            in_specs=[
                pl.BlockSpec((blk_b, 1, C), lambda b: (b, 0, 0)),
                pl.BlockSpec((blk_b, 4, Ho + 1, Wo + 1, C),
                             lambda b: (b, 0, 0, 0, 0)),
                pl.BlockSpec((9 * C, C2), lambda b: (0, 0)),
                pl.BlockSpec((1, C2), lambda b: (0, 0)),
                pl.BlockSpec((C, C2), lambda b: (0, 0)),
                pl.BlockSpec((1, C2), lambda b: (0, 0)),
            ],
            out_specs=pl.BlockSpec((blk_b, 1 + P, C2), lambda b: (b, 0, 0)),
            scratch_shapes=[pltpu.VMEM((blk_b, R, C2), out_dtype)],
        ),
        compiler_params=pltpu.CompilerParams(
            dimension_semantics=("parallel",),
            vmem_limit_bytes=48 * 1024 * 1024),
    )(cls_tok, phases, w_stk, b_comb, wcls_k, bcls_k)
    return out


def pool_reference(x, w_dw, b_dw, w_pw, b_pw, w_cls, b_cls):
    """Pure-JAX reference replicating the PyTorch module."""
    B, N, C = x.shape
    H = int(round((N - 1) ** 0.5))
    C2 = 2 * C
    cls_out = x[:, :1, :] @ w_cls.T + b_cls
    t = x[:, 1:, :].reshape(B, H, H, C).transpose(0, 3, 1, 2)    # NCHW
    dw = lax.conv_general_dilated(t, w_dw, window_strides=(2, 2),
                                  padding=((1, 1), (1, 1)),
                                  feature_group_count=C)
    dw = dw + b_dw[None, :, None, None]
    pw = lax.conv_general_dilated(dw, w_pw, (1, 1), 'VALID')
    pw = pw + b_pw[None, :, None, None]
    tok_out = pw.reshape(B, C2, -1).transpose(0, 2, 1)
    return jnp.concatenate([cls_out, tok_out], axis=1)


if __name__ == "__main__":
    B, dim, H = 8, 64, 16             # 2C = 128 -> lane-dense output stores
    N = 1 + H * H                     # 257 tokens (1 cls + 16x16 spatial)
    key = jax.random.PRNGKey(0)
    ks = jax.random.split(key, 7)

    x = jax.random.normal(ks[0], (B, N, dim), jnp.float32)
    # Synthetic parameters (shapes per nn.Conv2d / nn.Linear in the PyTorch __init__).
    w_dw = jax.random.normal(ks[1], (dim, 1, 3, 3), jnp.float32) * 0.2        # depthwise
    b_dw = jax.random.normal(ks[2], (dim,), jnp.float32) * 0.1
    w_pw = jax.random.normal(ks[3], (2 * dim, dim, 1, 1), jnp.float32) * 0.2  # 1x1 conv
    b_pw = jax.random.normal(ks[4], (2 * dim,), jnp.float32) * 0.1
    w_cls = jax.random.normal(ks[5], (2 * dim, dim), jnp.float32) * 0.2       # cls Linear
    b_cls = jax.random.normal(ks[6], (2 * dim,), jnp.float32) * 0.1

    ref = pool_reference(x, w_dw, b_dw, w_pw, b_pw, w_cls, b_cls)

    # Exact (f32) path: validates tap indexing, depthwise/pointwise fold, output layout.
    out_f32 = jax.block_until_ready(
        pool_forward(x, w_dw, b_dw, w_pw, b_pw, w_cls, b_cls,
                     compute_dtype=jnp.float32))
    assert out_f32.shape == (B, 1 + (H // 2) ** 2, 2 * dim), out_f32.shape
    assert jnp.allclose(out_f32, ref, atol=1e-3, rtol=1e-3), "f32 path mismatch"

    # Default bf16 path: bf16 MXU operands, f32 accumulation/bias (looser tolerance).
    out_bf16 = jax.block_until_ready(
        pool_forward(x, w_dw, b_dw, w_pw, b_pw, w_cls, b_cls))
    assert out_bf16.shape == (B, 1 + (H // 2) ** 2, 2 * dim), out_bf16.shape
    assert jnp.allclose(out_bf16, ref, atol=5e-2, rtol=5e-2), "bf16 path mismatch"

    print("KERNEL_OK")
</pallas_src>

<mosaic_0001>
module attributes {stable_mosaic.version = 11 : i64} {
  func.func @_pool_kernel(%arg0: i32, %arg1: memref<1x1x64xf32, #tpu.memory_space<vmem>>, %arg2: memref<1x4x9x9x64xf32, #tpu.memory_space<vmem>>, %arg3: memref<576x128xf32, #tpu.memory_space<vmem>>, %arg4: memref<1x128xf32, #tpu.memory_space<vmem>>, %arg5: memref<64x128xf32, #tpu.memory_space<vmem>>, %arg6: memref<1x128xf32, #tpu.memory_space<vmem>>, %arg7: memref<1x65x128xf32, #tpu.memory_space<vmem>>, %arg8: memref<1x72x128xf32, #tpu.memory_space<vmem>>) attributes {dimension_semantics = [#tpu.dimension_semantics<parallel>], iteration_bounds = array<i64: 8>, scalar_prefetch = 0 : i64, scratch_operands = 1 : i64, tpu.core_type = #tpu.core_type<tc>, window_params = [{transform_indices = @transform_0, window_bounds = array<i64: 1, 1, 64>}, {transform_indices = @transform_1, window_bounds = array<i64: 1, 4, 9, 9, 64>}, {pipeline_mode = #tpu.pipeline_mode<synchronous>, transform_indices = @transform_2, window_bounds = array<i64: 576, 128>}, {pipeline_mode = #tpu.pipeline_mode<synchronous>, transform_indices = @transform_3, window_bounds = array<i64: 1, 128>}, {pipeline_mode = #tpu.pipeline_mode<synchronous>, transform_indices = @transform_4, window_bounds = array<i64: 64, 128>}, {pipeline_mode = #tpu.pipeline_mode<synchronous>, transform_indices = @transform_5, window_bounds = array<i64: 1, 128>}, {transform_indices = @transform_6, window_bounds = array<i64: 1, 65, 128>}]} {
    %c0 = arith.constant 0 : index
    %c0_0 = arith.constant 0 : index
    %c0_1 = arith.constant 0 : index
    %0 = vector.load %arg1[%c0, %c0_0, %c0_1] : memref<1x1x64xf32, #tpu.memory_space<vmem>>, vector<1x1x64xf32>
    %1 = vector.shape_cast %0 : vector<1x1x64xf32> to vector<1x64xf32>
    %c0_2 = arith.constant 0 : index
    %c0_3 = arith.constant 0 : index
    %2 = vector.load %arg5[%c0_2, %c0_3] : memref<64x128xf32, #tpu.memory_space<vmem>>, vector<64x128xf32>
    %cst = arith.constant dense<0.000000e+00> : vector<1x128xf32>
    %3 = tpu.matmul %1, %2, %cst {dimension_numbers = #tpu.dot_dimension_numbers<[1], [0], [0], [1], [0, 0, 1, 1], [], []>} : vector<1x64xf32>, vector<64x128xf32>, vector<1x128xf32> -> vector<1x128xf32>
    %c0_4 = arith.constant 0 : index
    %c0_5 = arith.constant 0 : index
    %4 = vector.load %arg6[%c0_4, %c0_5] : memref<1x128xf32, #tpu.memory_space<vmem>>, vector<1x128xf32>
    %5 = arith.addf %3, %4 : vector<1x128xf32>
    %c0_6 = arith.constant 0 : index
    %c0_7 = arith.constant 0 : index
    %c0_8 = arith.constant 0 : index
    %c0_9 = arith.constant 0 : index
    %c0_10 = arith.constant 0 : index
    %6 = vector.load %arg2[%c0_6, %c0_7, %c0_8, %c0_9, %c0_10] : memref<1x4x9x9x64xf32, #tpu.memory_space<vmem>>, vector<1x1x8x8x64xf32>
    %7 = vector.shape_cast %6 : vector<1x1x8x8x64xf32> to vector<64x64xf32>
    %c0_11 = arith.constant 0 : index
    %c1 = arith.constant 1 : index
    %c0_12 = arith.constant 0 : index
    %c0_13 = arith.constant 0 : index
    %c0_14 = arith.constant 0 : index
    %8 = vector.load %arg2[%c0_11, %c1, %c0_12, %c0_13, %c0_14] : memref<1x4x9x9x64xf32, #tpu.memory_space<vmem>>, vector<1x1x8x8x64xf32>
    %9 = vector.shape_cast %8 : vector<1x1x8x8x64xf32> to vector<64x64xf32>
    %c0_15 = arith.constant 0 : index
    %c0_16 = arith.constant 0 : index
    %c0_17 = arith.constant 0 : index
    %c1_18 = arith.constant 1 : index
    %c0_19 = arith.constant 0 : index
    %10 = vector.load %arg2[%c0_15, %c0_16, %c0_17, %c1_18, %c0_19] : memref<1x4x9x9x64xf32, #tpu.memory_space<vmem>>, vector<1x1x8x8x64xf32>
    %11 = vector.shape_cast %10 : vector<1x1x8x8x64xf32> to vector<64x64xf32>
    %c0_20 = arith.constant 0 : index
    %c2 = arith.constant 2 : index
    %c0_21 = arith.constant 0 : index
    %c0_22 = arith.constant 0 : index
    %c0_23 = arith.constant 0 : index
    %12 = vector.load %arg2[%c0_20, %c2, %c0_21, %c0_22, %c0_23] : memref<1x4x9x9x64xf32, #tpu.memory_space<vmem>>, vector<1x1x8x8x64xf32>
    %13 = vector.shape_cast %12 : vector<1x1x8x8x64xf32> to vector<64x64xf32>
    %c0_24 = arith.constant 0 : index
    %c3 = arith.constant 3 : index
    %c0_25 = arith.constant 0 : index
    %c0_26 = arith.constant 0 : index
    %c0_27 = arith.constant 0 : index
    %14 = vector.load %arg2[%c0_24, %c3, %c0_25, %c0_26, %c0_27] : memref<1x4x9x9x64xf32, #tpu.memory_space<vmem>>, vector<1x1x8x8x64xf32>
    %15 = vector.shape_cast %14 : vector<1x1x8x8x64xf32> to vector<64x64xf32>
    %c0_28 = arith.constant 0 : index
    %c2_29 = arith.constant 2 : index
    %c0_30 = arith.constant 0 : index
    %c1_31 = arith.constant 1 : index
    %c0_32 = arith.constant 0 : index
    %16 = vector.load %arg2[%c0_28, %c2_29, %c0_30, %c1_31, %c0_32] : memref<1x4x9x9x64xf32, #tpu.memory_space<vmem>>, vector<1x1x8x8x64xf32>
    %17 = vector.shape_cast %16 : vector<1x1x8x8x64xf32> to vector<64x64xf32>
    %c0_33 = arith.constant 0 : index
    %c0_34 = arith.constant 0 : index
    %c1_35 = arith.constant 1 : index
    %c0_36 = arith.constant 0 : index
    %c0_37 = arith.constant 0 : index
    %18 = vector.load %arg2[%c0_33, %c0_34, %c1_35, %c0_36, %c0_37] : memref<1x4x9x9x64xf32, #tpu.memory_space<vmem>>, vector<1x1x8x8x64xf32>
    %19 = vector.shape_cast %18 : vector<1x1x8x8x64xf32> to vector<64x64xf32>
    %c0_38 = arith.constant 0 : index
    %c1_39 = arith.constant 1 : index
    %c1_40 = arith.constant 1 : index
    %c0_41 = arith.constant 0 : index
    %c0_42 = arith.constant 0 : index
    %20 = vector.load %arg2[%c0_38, %c1_39, %c1_40, %c0_41, %c0_42] : memref<1x4x9x9x64xf32, #tpu.memory_space<vmem>>, vector<1x1x8x8x64xf32>
    %21 = vector.shape_cast %20 : vector<1x1x8x8x64xf32> to vector<64x64xf32>
    %c0_43 = arith.constant 0 : index
    %c0_44 = arith.constant 0 : index
    %c1_45 = arith.constant 1 : index
    %c1_46 = arith.constant 1 : index
    %c0_47 = arith.constant 0 : index
    %22 = vector.load %arg2[%c0_43, %c0_44, %c1_45, %c1_46, %c0_47] : memref<1x4x9x9x64xf32, #tpu.memory_space<vmem>>, vector<1x1x8x8x64xf32>
    %23 = vector.shape_cast %22 : vector<1x1x8x8x64xf32> to vector<64x64xf32>
    %24 = tpu.concatenate %7, %9, %11, %13, %15, %17, %19, %21, %23 in 1 : vector<64x64xf32>, vector<64x64xf32>, vector<64x64xf32>, vector<64x64xf32>, vector<64x64xf32>, vector<64x64xf32>, vector<64x64xf32>, vector<64x64xf32>, vector<64x64xf32> -> vector<64x576xf32>
    %c0_48 = arith.constant 0 : index
    %c0_49 = arith.constant 0 : index
    %25 = vector.load %arg3[%c0_48, %c0_49] : memref<576x128xf32, #tpu.memory_space<vmem>>, vector<576x128xf32>
    %cst_50 = arith.constant dense<0.000000e+00> : vector<64x128xf32>
    %26 = tpu.matmul %24, %25, %cst_50 {dimension_numbers = #tpu.dot_dimension_numbers<[1], [0], [0], [1], [0, 0, 1, 1], [], []>} : vector<64x576xf32>, vector<576x128xf32>, vector<64x128xf32> -> vector<64x128xf32>
    %c0_51 = arith.constant 0 : index
    %c0_52 = arith.constant 0 : index
    %27 = vector.load %arg4[%c0_51, %c0_52] : memref<1x128xf32, #tpu.memory_space<vmem>>, vector<1x128xf32>
    %28 = vector.broadcast %27 : vector<1x128xf32> to vector<64x128xf32>
    %29 = arith.addf %26, %28 : vector<64x128xf32>
    %30 = vector.shape_cast %29 : vector<64x128xf32> to vector<1x64x128xf32>
    %c0_53 = arith.constant 0 : index
    %c8 = arith.constant 8 : index
    %c0_54 = arith.constant 0 : index
    %31 = vector.load %arg8[%c0_53, %c8, %c0_54] : memref<1x72x128xf32, #tpu.memory_space<vmem>>, vector<1x64x128xf32>
    tpu.vector_store %arg8[%c0_53, %c8, %c0_54], %30 {strides = array<i32>} : memref<1x72x128xf32, #tpu.memory_space<vmem>>, vector<1x64x128xf32>,
    %32 = vector.shape_cast %5 : vector<1x128xf32> to vector<1x1x128xf32>
    %c0_55 = arith.constant 0 : index
    %c7 = arith.constant 7 : index
    %c0_56 = arith.constant 0 : index
    %33 = vector.load %arg8[%c0_55, %c7, %c0_56] : memref<1x72x128xf32, #tpu.memory_space<vmem>>, vector<1x1x128xf32>
    tpu.vector_store %arg8[%c0_55, %c7, %c0_56], %32 {strides = array<i32>} : memref<1x72x128xf32, #tpu.memory_space<vmem>>, vector<1x1x128xf32>,
    %c0_57 = arith.constant 0 : index
    %c7_58 = arith.constant 7 : index
    %c0_59 = arith.constant 0 : index
    %34 = vector.load %arg8[%c0_57, %c7_58, %c0_59] : memref<1x72x128xf32, #tpu.memory_space<vmem>>, vector<1x65x128xf32>
    %c0_60 = arith.constant 0 : index
    %c0_61 = arith.constant 0 : index
    %c0_62 = arith.constant 0 : index
    %35 = vector.load %arg7[%c0_60, %c0_61, %c0_62] : memref<1x65x128xf32, #tpu.memory_space<vmem>>, vector<1x65x128xf32>
    tpu.vector_store %arg7[%c0_60, %c0_61, %c0_62], %34 {strides = array<i32>} : memref<1x65x128xf32, #tpu.memory_space<vmem>>, vector<1x65x128xf32>,
    return
  }
  func.func @transform_0(%arg0: i32) -> (i32, i32, i32) {
    %c0_i32 = arith.constant 0 : i32
    %c0_i32_0 = arith.constant 0 : i32
    %c0_i32_1 = arith.constant 0 : i32
    return %arg0, %c0_i32, %c0_i32_0 : i32, i32, i32
  }
  func.func @transform_1(%arg0: i32) -> (i32, i32, i32, i32, i32) {
    %c0_i32 = arith.constant 0 : i32
    %c0_i32_0 = arith.constant 0 : i32
    %c0_i32_1 = arith.constant 0 : i32
    %c0_i32_2 = arith.constant 0 : i32
    %c0_i32_3 = arith.constant 0 : i32
    return %arg0, %c0_i32, %c0_i32_0, %c0_i32_1, %c0_i32_2 : i32, i32, i32, i32, i32
  }
  func.func @transform_2(%arg0: i32) -> (i32, i32) {
    %c0_i32 = arith.constant 0 : i32
    %c0_i32_0 = arith.constant 0 : i32
    %c0_i32_1 = arith.constant 0 : i32
    return %c0_i32, %c0_i32_0 : i32, i32
  }
  func.func @transform_3(%arg0: i32) -> (i32, i32) {
    %c0_i32 = arith.constant 0 : i32
    %c0_i32_0 = arith.constant 0 : i32
    %c0_i32_1 = arith.constant 0 : i32
    return %c0_i32, %c0_i32_0 : i32, i32
  }
  func.func @transform_4(%arg0: i32) -> (i32, i32) {
    %c0_i32 = arith.constant 0 : i32
    %c0_i32_0 = arith.constant 0 : i32
    %c0_i32_1 = arith.constant 0 : i32
    return %c0_i32, %c0_i32_0 : i32, i32
  }
  func.func @transform_5(%arg0: i32) -> (i32, i32) {
    %c0_i32 = arith.constant 0 : i32
    %c0_i32_0 = arith.constant 0 : i32
    %c0_i32_1 = arith.constant 0 : i32
    return %c0_i32, %c0_i32_0 : i32, i32
  }
  func.func @transform_6(%arg0: i32) -> (i32, i32, i32) {
    %c0_i32 = arith.constant 0 : i32
    %c0_i32_0 = arith.constant 0 : i32
    %c0_i32_1 = arith.constant 0 : i32
    return %arg0, %c0_i32, %c0_i32_0 : i32, i32, i32
  }
}

</mosaic_0001>

<bundles_post_ra>
// kernel: tpu_custom_call.1
= control target key start
LH: loop header
LB: loop body
LE: loop exit
PB: predicated region body
PF: predicated region fallthrough
CT: control target
= control target key end

     0   :  { %s1170_s21 = smov 0   ;;  %s1635_s0 = inlined_call_operand.vmem [shape: f32[8,1,64], index: 0, kind: input, shape index: {}]   ;;  %s1636_s1 = inlined_call_operand.vmem [shape: f32[8,4,9,9,64], index: 1, kind: input, shape index: {}]   ;;  %s1637_s2 = inlined_call_operand.vmem [shape: f32[576,128], index: 2, kind: input, shape index: {}]   ;;  %s1638_s3 = inlined_call_operand.vmem [shape: f32[1,128], index: 3, kind: input, shape index: {}]   ;;  %s1639_s4 = inlined_call_operand.vmem [shape: f32[64,128], index: 4, kind: input, shape index: {}]   ;;  %s1640_s5 = inlined_call_operand.vmem [shape: f32[1,128], index: 5, kind: input, shape index: {}]   ;;  %s1641_s6 = inlined_call_operand.vmem [shape: f32[8,65,128], index: 6, kind: output, shape index: {}]  }
   0x1 LB: > { %s933_s22 = sadd.s32 4294967295, %s1132_s21   ;;  %p937_p0 = scmp.ge.s32.totalorder %s1132_s21, 1  ;;  %s1132_s21 = sphi %s1170_s21, %s16_s21  }
   0x2   : > { %p220_p1 = scmp.lt.s32.totalorder %s1132_s21, 9 }
   0x4   : > { %p221_p2 = pnand %p937_p0, %p220_p1 }
   0x5   : > { %p253_p3 = scmp.lt.s32.totalorder (!%p221_p2), %s933_s22, 7  ;;  %s1134_s27 = smov (!%p221_p2), 64  }
   0x6   : > { %224 = sbr.rel (%p221_p2) target bundleno = 373 (0x175), region = 44 }
   0xb   : > { %s1643_s22 = smov (!%p253_p3, %s933_s22), 7  ;;  %v552_v14 = vld [vmem:[%s1637_s2 + $0x78] sm:$0xff]  ;;  %v551_v15 = vld [vmem:[%s1637_s2 + $0x70] sm:$0xff]  ;;  %v550_v17 = vld [vmem:[%s1637_s2 + $0x68] sm:$0xff]  ;;  %vm276_vm0 = vcmask 523264  }
   0xc   : > { %s1039_s23 = smul.u32 576, %s1643_s22  ;;  %1008 = vmatpush.msra.mxu3 %v552_v14  ;;  %1007 = vmatpush.msra.mxu2 %v552_v14  ;;  %v549_v20 = vld [vmem:[%s1637_s2 + $0x60] sm:$0xff]  ;;  %v548_v24 = vld [vmem:[%s1637_s2 + $0x58] sm:$0xff]  ;;  %v547_v27 = vld [vmem:[%s1637_s2 + $0x50] sm:$0xff]  ;;  %s255_s29 = scalar_lea.vmem %s1635_s0, %s1643_s22 }
   0xd   : > { %637 = vmatpush.msra.mxu1 %v552_v14  ;;  %v274_v25 = vld [vmem:[%s1639_s4 + $0x38] sm:$0xff]  ;;  %v546_v29 = vld [vmem:[%s1637_s2 + $0x48] sm:$0xff]  ;;  %v545_v32 = vld [vmem:[%s1637_s2 + $0x40] sm:$0xff]  ;;  %s1040_s28 = smul.u32 72, %s1643_s22 }
   0xe   : > { %s1184_s26 = scalar_lea.vmem %s1636_s1, %s1039_s23  ;;  %1010 = vmatpush.msra.mxu3 %v551_v15  ;;  %1009 = vmatpush.msra.mxu2 %v551_v15  ;;  %v544_v36 = vld [vmem:[%s1637_s2 + $0x38] sm:$0xff]  ;;  %v543_v38 = vld [vmem:[%s1637_s2 + $0x30] sm:$0xff]  ;;  %v542_v40 = vld [vmem:[%s1637_s2 + $0x28] sm:$0xff] }
   0xf   : > { %v1187_v0 = vld [vmem:[%s1184_s26 + $0xc0] sm:$0xff]  ;;  %v941_v1 = vld [vmem:[%s1184_s26 + $0x90] sm:$0xff]  ;;  %638 = vmatpush.msra.mxu1 %v551_v15  ;;  %288 = vmatpush.msra.mxu0 %v274_v25  ;;  %v540_v47 = vld [vmem:[%s1637_s2 + $0x18] sm:$0xff]  ;;  %s1613_s30 = scalar_lea.vmem %s1641_s6, %s1040_s28 }
  0x10   : > { %391 = vrot.lane.b32.xlu0 %v1187_v0, %s1134_s27  ;;  %v1193_v2 = vld [vmem:[%s1184_s26 + $0xf0] sm:$0xff]  ;;  %v1199_v4 = vld [vmem:[%s1184_s26 + $0xe0] sm:$0xff]  ;;  %1012 = vmatpush.msra.mxu3 %v550_v17  ;;  %v538_v51 = vld [vmem:[%s1637_s2 + $0x8] sm:$0xff] }
  0x11   : > { %v1196_v3 = vld [vmem:[%s1184_s26 + $0xd0] sm:$0xff]  ;;  %v1055_v5 = vpack.i.bf16 %v1193_v2, %v941_v1  ;;  %v949_v6 = vld [vmem:[%s1184_s26 + $0x120] sm:$0xff]  ;;  %1011 = vmatpush.msra.mxu2 %v550_v17  ;;  %639 = vmatpush.msra.mxu1 %v550_v17  ;;  %v584_v57 = vld [vmem:[%s1637_s2 + $0x178] sm:$0xff] }
  0x12   : > { %v965_v7 = vld [vmem:[%s1184_s26 + $0x121] sm:$0xff]  ;;  %v1050_v9 = vpack.i.bf16 %v1199_v4, %v1196_v3  ;;  %v943_v12 = vld [vmem:[%s1184_s26 + $0xb0] sm:$0xff]  ;;  %1014 = vmatpush.msra.mxu3 %v549_v20  ;;  %v568_v61 = vld [vmem:[%s1637_s2 + $0xf8] sm:$0xff] }
  0x13   : > { %1056 = vrot.lane.b32.xlu1 %v1055_v5, %s1134_s27  ;;  %v1065_v8 = vpack.i.bf16 %v965_v7, %v949_v6  ;;  %v942_v10 = vld [vmem:[%s1184_s26 + $0xa0] sm:$0xff]  ;;  %v950_v13 = vld [vmem:[%s1184_s26 + $0x130] sm:$0xff]  ;;  %1013 = vmatpush.msra.mxu2 %v549_v20  ;;  %v272_v60 = vld [vmem:[%s1639_s4 + $0x28] sm:$0xff] }
  0x14   : > { %v1209_v11 = vld [vmem:[%s1184_s26 + $0x100] sm:$0xff]  ;;  %v966_v18 = vld [vmem:[%s1184_s26 + $0x131] sm:$0xff]  ;;  %v1070_v19 = vpack.i.bf16 %v950_v13, %v943_v12  ;;  %640 = vmatpush.msra.mxu1 %v549_v20  ;;  %1016 = vmatpush.msra.mxu3 %v548_v24  ;;  %v582_v62 = vld [vmem:[%s1637_s2 + $0x168] sm:$0xff] }
  0x15   : > { %1066 = vrot.lane.b32.xlu2 %v1065_v8, %s1134_s27  ;;  %v1060_v16 = vpack.i.bf16 %v942_v10, %v1209_v11  ;;  %v1075_v21 = vpack.i.bf16 %v942_v10, %v966_v18  ;;  %v951_v22 = vld [vmem:[%s1184_s26 + $0x140] sm:$0xff]  ;;  %v952_v26 = vld [vmem:[%s1184_s26 + $0x150] sm:$0xff]  ;;  %1015 = vmatpush.msra.mxu2 %v548_v24  ;;  %v268_v8 = vld [vmem:[%s1639_s4 + $0x8] sm:$0xff] }
  0x16   : > { %v967_v23 = vld [vmem:[%s1184_s26 + $0x141] sm:$0xff]  ;;  %v968_v30 = vld [vmem:[%s1184_s26 + $0x151] sm:$0xff]  ;;  %v1085_v31 = vpack.i.bf16 %v952_v26, %v943_v12  ;;  %1018 = vmatpush.msra.mxu3 %v547_v27  ;;  %641 = vmatpush.msra.mxu1 %v548_v24 }
  0x17   : > { %v1080_v28 = vpack.i.bf16 %v967_v23, %v951_v22  ;;  %1017 = vmatpush.msra.mxu2 %v547_v27  ;;  %v1090_v33 = vpack.i.bf16 %v1187_v0, %v968_v30  ;;  %v953_v34 = vld [vmem:[%s1184_s26 + $0x160] sm:$0xff]  ;;  %v954_v37 = vld [vmem:[%s1184_s26 + $0x170] sm:$0xff]  ;;  %v578_v10 = vld [vmem:[%s1637_s2 + $0x148] sm:$0xff] }
  0x18   : > { %1051 = vrot.lane.b32.xlu0 %v1050_v9, %s1134_s27  ;;  %1020 = vmatpush.msra.mxu3 %v546_v29  ;;  %v969_v35 = vld [vmem:[%s1184_s26 + $0x161] sm:$0xff]  ;;  %v970_v41 = vld [vmem:[%s1184_s26 + $0x171] sm:$0xff]  ;;  %v1100_v42 = vpack.i.bf16 %v954_v37, %v1196_v3 }
  0x19   : > { %1019 = vmatpush.msra.mxu2 %v546_v29  ;;  %642 = vmatpush.msra.mxu1 %v547_v27  ;;  %v1095_v39 = vpack.i.bf16 %v969_v35, %v953_v34  ;;  %v541_v43 = vld [vmem:[%s1637_s2 + $0x20] sm:$0xff]  ;;  %v1105_v44 = vpack.i.bf16 %v1199_v4, %v970_v41  ;;  %v956_v48 = vld [vmem:[%s1184_s26 + $0x190] sm:$0xff]  ;;  %v566_v3 = vld [vmem:[%s1637_s2 + $0xe8] sm:$0xff] }
  0x1a   : > { %1022 = vmatpush.msra.mxu3 %v545_v32  ;;  %v955_v45 = vld [vmem:[%s1184_s26 + $0x180] sm:$0xff]  ;;  %v539_v49 = vld [vmem:[%s1637_s2 + $0x10] sm:$0xff]  ;;  %v1115_v53 = vpack.i.bf16 %v956_v48, %v1193_v2  ;;  %v270_v2 = vld [vmem:[%s1639_s4 + $0x18] sm:$0xff] }
  0x1b   : > { %1061 = vrot.lane.b32.xlu1 %v1060_v16, %s1134_s27  ;;  %1021 = vmatpush.msra.mxu2 %v545_v32  ;;  %v971_v46 = vld [vmem:[%s1184_s26 + $0x181] sm:$0xff]  ;;  %v972_v52 = vld [vmem:[%s1184_s26 + $0x191] sm:$0xff] }
  0x1c   : > { %643 = vmatpush.msra.mxu1 %v546_v29  ;;  %1024 = vmatpush.msra.mxu3 %v544_v36  ;;  %v1110_v50 = vpack.i.bf16 %v971_v46, %v955_v45  ;;  %v537_v54 = vld [vmem:[%s1637_s2] sm:$0xff]  ;;  %v1120_v55 = vpack.i.bf16 %v1209_v11, %v972_v52  ;;  %v988_v56 = vld [vmem:[%s1184_s26 + $0x110] sm:$0xff]  ;;  %v580_v4 = vld [vmem:[%s1637_s2 + $0x158] sm:$0xff] }
  0x1d   : > { %1071 = vrot.lane.b32.xlu2 %v1070_v19, %s1134_s27  ;;  %1023 = vmatpush.msra.mxu2 %v544_v36  ;;  %v273_v58 = vld [vmem:[%s1639_s4 + $0x30] sm:$0xff]  ;;  %v271_v63 = vld [vmem:[%s1639_s4 + $0x20] sm:$0xff]  ;;  %v564_v9 = vld [vmem:[%s1637_s2 + $0xd8] sm:$0xff] }
  0x1e   : > { %1026 = vmatpush.msra.mxu3 %v543_v38  ;;  %644 = vmatpush.msra.mxu1 %v545_v32  ;;  %v583_v59 = vld [vmem:[%s1637_s2 + $0x170] sm:$0xff]  ;;  %v581_v1 = vld [vmem:[%s1637_s2 + $0x160] sm:$0xff]  ;;  %v600_v14 = vld [vmem:[%s1637_s2 + $0x1f8] sm:$0xff] }
  0x1f   : > { %1025 = vmatpush.msra.mxu2 %v543_v38  ;;  %289 = vmatpush.msra.mxu0 %v273_v58  ;;  %v567_v0 = vld [vmem:[%s1637_s2 + $0xf0] sm:$0xff]  ;;  %v565_v6 = vld [vmem:[%s1637_s2 + $0xe0] sm:$0xff]  ;;  %v562_v15 = vld [vmem:[%s1637_s2 + $0xc8] sm:$0xff] }
  0x20   : > { %1076 = vrot.lane.b32.xlu0 %v1075_v21, %s1134_s27  ;;  %1028 = vmatpush.msra.mxu3 %v542_v40  ;;  %v269_v5 = vld [vmem:[%s1639_s4 + $0x10] sm:$0xff]  ;;  %v267_v11 = vld [vmem:[%s1639_s4] sm:$0xff]  ;;  %v576_v16 = vld [vmem:[%s1637_s2 + $0x138] sm:$0xff] }
  0x21   : > { %1027 = vmatpush.msra.mxu2 %v542_v40  ;;  %645 = vmatpush.msra.mxu1 %v544_v36  ;;  %v579_v7 = vld [vmem:[%s1637_s2 + $0x150] sm:$0xff]  ;;  %v577_v13 = vld [vmem:[%s1637_s2 + $0x140] sm:$0xff]  ;;  %v598_v20 = vld [vmem:[%s1637_s2 + $0x1e8] sm:$0xff] }
  0x22   : > { %1030 = vmatpush.msra.mxu3 %v541_v43  ;;  %290 = vmatpush.msra.mxu0 %v272_v60  ;;  %v563_v12 = vld [vmem:[%s1637_s2 + $0xd0] sm:$0xff]  ;;  %v561_v18 = vld [vmem:[%s1637_s2 + $0xc0] sm:$0xff]  ;;  %v560_v21 = vld [vmem:[%s1637_s2 + $0xb8] sm:$0xff] }
  0x23   : > { %1081 = vrot.lane.b32.xlu1 %v1080_v28, %s1134_s27  ;;  %1029 = vmatpush.msra.mxu2 %v541_v43  ;;  %v599_v17 = vld [vmem:[%s1637_s2 + $0x1f0] sm:$0xff]  ;;  %v574_v22 = vld [vmem:[%s1637_s2 + $0x128] sm:$0xff]  ;;  %v597_v23 = vld [vmem:[%s1637_s2 + $0x1e0] sm:$0xff] }
  0x24   : > { %646 = vmatpush.msra.mxu1 %v543_v38  ;;  %1032 = vmatpush.msra.mxu3 %v540_v47  ;;  %v575_v19 = vld [vmem:[%s1637_s2 + $0x130] sm:$0xff]  ;;  %v573_v25 = vld [vmem:[%s1637_s2 + $0x120] sm:$0xff]  ;;  %v596_v26 = vld [vmem:[%s1637_s2 + $0x1d8] sm:$0xff] }
  0x25   : > { %1086 = vrot.lane.b32.xlu2 %v1085_v31, %s1134_s27  ;;  %1031 = vmatpush.msra.mxu2 %v540_v47  ;;  %v559_v24 = vld [vmem:[%s1637_s2 + $0xb0] sm:$0xff]  ;;  %v558_v27 = vld [vmem:[%s1637_s2 + $0xa8] sm:$0xff]  ;;  %v608_v28 = vld [vmem:[%s1637_s2 + $0x238] sm:$0xff] }
  0x26   : > { %1034 = vmatpush.msra.mxu3 %v539_v49  ;;  %647 = vmatpush.msra.mxu1 %v542_v40  ;;  %v572_v29 = vld [vmem:[%s1637_s2 + $0x118] sm:$0xff]  ;;  %v595_v30 = vld [vmem:[%s1637_s2 + $0x1d0] sm:$0xff]  ;;  %v557_v31 = vld [vmem:[%s1637_s2 + $0xa0] sm:$0xff] }
  0x27   : > { %1033 = vmatpush.msra.mxu2 %v539_v49  ;;  %291 = vmatpush.msra.mxu0 %v271_v63  ;;  %v571_v32 = vld [vmem:[%s1637_s2 + $0x110] sm:$0xff]  ;;  %v556_v35 = vld [vmem:[%s1637_s2 + $0x98] sm:$0xff]  ;;  %v570_v36 = vld [vmem:[%s1637_s2 + $0x108] sm:$0xff] }
  0x28   : > { %1091 = vrot.lane.b32.xlu0 %v1090_v33, %s1134_s27  ;;  %1036 = vmatpush.msra.mxu3 %v538_v51  ;;  %v594_v33 = vld [vmem:[%s1637_s2 + $0x1c8] sm:$0xff]  ;;  %v607_v34 = vld [vmem:[%s1637_s2 + $0x230] sm:$0xff]  ;;  %v593_v37 = vld [vmem:[%s1637_s2 + $0x1c0] sm:$0xff] }
  0x29   : > { %1035 = vmatpush.msra.mxu2 %v538_v51  ;;  %648 = vmatpush.msra.mxu1 %v541_v43  ;;  %v555_v38 = vld [vmem:[%s1637_s2 + $0x90] sm:$0xff]  ;;  %v569_v40 = vld [vmem:[%s1637_s2 + $0x100] sm:$0xff]  ;;  %v554_v43 = vld [vmem:[%s1637_s2 + $0x88] sm:$0xff] }
  0x2a   : > { %1038 = vmatpush.msra.mxu3 %v537_v54  ;;  %292 = vmatpush.msra.mxu0 %v270_v2  ;;  %v1444_v41 = vld [vmem:[%s1184_s26 + $0x30] sm:$0xff]  ;;  %v605_v45 = vld [vmem:[%s1637_s2 + $0x220] sm:$0xff] }
  0x2b   : > { %1096 = vrot.lane.b32.xlu1 %v1095_v39, %s1134_s27  ;;  %1037 = vmatpush.msra.mxu2 %v537_v54  ;;  %v606_v39 = vld [vmem:[%s1637_s2 + $0x228] sm:$0xff]  ;;  %v553_v48 = vld [vmem:[%s1637_s2 + $0x80] sm:$0xff]  ;;  %v603_v58 = vld [vmem:[%s1637_s2 + $0x210] sm:$0xff] }
  0x2c   : > { %649 = vmatpush.msra.mxu1 %v540_v47  ;;  %719 = vmatpush.msrb.mxu3 %v584_v57  ;;  %v588_v57 = vld [vmem:[%s1637_s2 + $0x198] sm:$0xff]  ;;  %v587_v60 = vld [vmem:[%s1637_s2 + $0x190] sm:$0xff]  ;;  %v1497_v63 = vld [vmem:[%s1184_s26 + $0x40] sm:$0xff] }
  0x2d   : > { %1101 = vrot.lane.b32.xlu2 %v1100_v42, %s1134_s27  ;;  %678 = vmatpush.msrb.mxu2 %v568_v61  ;;  %v592_v42 = vld [vmem:[%s1637_s2 + $0x1b8] sm:$0xff]  ;;  %v602_v61 = vld [vmem:[%s1637_s2 + $0x208] sm:$0xff] }
  0x2e   : > { %650 = vmatpush.msra.mxu1 %v539_v49  ;;  %720 = vmatpush.msrb.mxu3 %v583_v59  ;;  %v590_v49 = vld [vmem:[%s1637_s2 + $0x1a8] sm:$0xff] }
  0x2f   : > { %679 = vmatpush.msrb.mxu2 %v567_v0  ;;  %293 = vmatpush.msra.mxu0 %v269_v5  ;;  %v586_v0 = vld [vmem:[%s1637_s2 + $0x188] sm:$0xff]  ;;  %v1507_v5 = vld [vmem:[%s1184_s26 + $0x70] sm:$0xff] }
  0x30   : > { %1106 = vrot.lane.b32.xlu0 %v1105_v44, %s1134_s27  ;;  %651 = vmatpush.msra.mxu1 %v538_v51  ;;  %v591_v44 = vld [vmem:[%s1637_s2 + $0x1b0] sm:$0xff] }
  0x31   : > { %721 = vmatpush.msrb.mxu3 %v582_v62  ;;  %680 = vmatpush.msrb.mxu2 %v566_v3 }
  0x32   : > { %652 = vmatpush.msra.mxu1 %v537_v54  ;;  %294 = vmatpush.msra.mxu0 %v268_v8 }
  0x33   : > { %1111 = vrot.lane.b32.xlu1 %v1110_v50, %s1134_s27  ;;  %722 = vmatpush.msrb.mxu3 %v581_v1  ;;  %v604_v50 = vld [vmem:[%s1637_s2 + $0x218] sm:$0xff] }
  0x34   : > { %681 = vmatpush.msrb.mxu2 %v565_v6  ;;  %295 = vmatpush.msra.mxu0 %v267_v11  ;;  %v301_v6 = vld [vmem:[%s1184_s26 + $0x10] sm:$0xff] }
  0x35   : > { %1116 = vrot.lane.b32.xlu2 %v1115_v53, %s1134_s27  ;;  %723 = vmatpush.msrb.mxu3 %v580_v4  ;;  %v300_v53 = vld [vmem:[%s1184_s26] sm:$0xff] }
  0x36   : > { %682 = vmatpush.msrb.mxu2 %v564_v9  ;;  %760 = vmatpush.msrb.mxu0 %v600_v14  ;;  %v585_v9 = vld [vmem:[%s1637_s2 + $0x180] sm:$0xff]  ;;  %v1520_v14 = vld [vmem:[%s1184_s26 + $0x50] sm:$0xff] }
  0x37   : > { %724 = vmatpush.msrb.mxu3 %v579_v7  ;;  %809 = vmatpush.msrb.mxu1 %v608_v28  ;;  %v306_v28 = vld [vmem:[%s1184_s26 + $0x60] sm:$0xff] }
  0x38   : > { %1121 = vrot.lane.b32.xlu0 %v1120_v55, %s1134_s27  ;;  %683 = vmatpush.msrb.mxu2 %v563_v12  ;;  %v589_v55 = vld [vmem:[%s1637_s2 + $0x1a0] sm:$0xff] }
  0x39   : > { %725 = vmatpush.msrb.mxu3 %v578_v10  ;;  %761 = vmatpush.msrb.mxu0 %v599_v17  ;;  %v601_v10 = vld [vmem:[%s1637_s2 + $0x200] sm:$0xff] }
  0x3a   : > { %684 = vmatpush.msrb.mxu2 %v562_v15  ;;  %810 = vmatpush.msrb.mxu1 %v607_v34 }
  0x3b   : > { %495 = vrot.lane.b32.xlu1 %v988_v56, %s1134_s27  ;;  %726 = vmatpush.msrb.mxu3 %v577_v13  ;;  %v266_v56 = vld [vmem:[%s255_s29] sm:$0x1] }
  0x3c   : > { %685 = vmatpush.msrb.mxu2 %v561_v18  ;;  %762 = vmatpush.msrb.mxu0 %v598_v20  ;;  %v957_v18 = vld [vmem:[%s1184_s26 + $0x1b0] sm:$0xff]  ;;  %v302_v20 = vld [vmem:[%s1184_s26 + $0x20] sm:$0xff] }
  0x3d   : > { %727 = vmatpush.msrb.mxu3 %v576_v16  ;;  %811 = vmatpush.msrb.mxu1 %v606_v39  ;;  %v317_v39 = vld [vmem:[%s1184_s26 + $0x1] sm:$0xff] }
  0x3e   : > { %686 = vmatpush.msrb.mxu2 %v560_v21  ;;  %763 = vmatpush.msrb.mxu0 %v597_v23 }
  0x3f   : > { %728 = vmatpush.msrb.mxu3 %v575_v19  ;;  %812 = vmatpush.msrb.mxu1 %v605_v45 }
  0x40   : > { %687 = vmatpush.msrb.mxu2 %v559_v24  ;;  %764 = vmatpush.msrb.mxu0 %v596_v26 }
  0x41   : > { %729 = vmatpush.msrb.mxu3 %v574_v22  ;;  %813 = vmatpush.msrb.mxu1 %v604_v50 }
  0x42   : > { %688 = vmatpush.msrb.mxu2 %v558_v27  ;;  %765 = vmatpush.msrb.mxu0 %v595_v30  ;;  %v958_v30 = vld [vmem:[%s1184_s26 + $0x1c0] sm:$0xff] }
  0x43   : > { %730 = vmatpush.msrb.mxu3 %v573_v25  ;;  %940 = vmatmul.msk.f32.vlgmr.msra.gmra.mxu0 %vm276_vm0, %v266_v56 }
  0x44   : > { %689 = vmatpush.msrb.mxu2 %v557_v31  ;;  %766 = vmatpush.msrb.mxu0 %v594_v33 }
  0x45   : > { %731 = vmatpush.msrb.mxu3 %v572_v29  ;;  %814 = vmatpush.msrb.mxu1 %v603_v58  ;;  %v320_v58 = vld [vmem:[%s1184_s26 + $0x31] sm:$0xff] }
  0x46   : > { %690 = vmatpush.msrb.mxu2 %v556_v35  ;;  %767 = vmatpush.msrb.mxu0 %v593_v37  ;;  %v318_v37 = vld [vmem:[%s1184_s26 + $0x11] sm:$0xff] }
  0x47   : > { %732 = vmatpush.msrb.mxu3 %v571_v32  ;;  %815 = vmatpush.msrb.mxu1 %v602_v61  ;;  %v961_v61 = vld [vmem:[%s1184_s26 + $0x1f0] sm:$0xff] }
  0x48   : > { %691 = vmatpush.msrb.mxu2 %v555_v38  ;;  %768 = vmatpush.msrb.mxu0 %v592_v42  ;;  %v959_v42 = vld [vmem:[%s1184_s26 + $0x1d0] sm:$0xff] }
  0x49   : > { %733 = vmatpush.msrb.mxu3 %v570_v36  ;;  %816 = vmatpush.msrb.mxu1 %v601_v10 }
  0x4a   : > { %692 = vmatpush.msrb.mxu2 %v554_v43  ;;  %769 = vmatpush.msrb.mxu0 %v591_v44 }
  0x4b   : > { %734 = vmatpush.msrb.mxu3 %v569_v40 }
  0x4c   : > { %693 = vmatpush.msrb.mxu2 %v553_v48  ;;  %770 = vmatpush.msrb.mxu0 %v590_v49  ;;  %v319_v48 = vld [vmem:[%s1184_s26 + $0x21] sm:$0xff] }
  0x4e   : > { %771 = vmatpush.msrb.mxu0 %v589_v55 }
  0x50   : > { %772 = vmatpush.msrb.mxu0 %v588_v57 }
  0x52   : > { %773 = vmatpush.msrb.mxu0 %v587_v60 }
  0x54   : > { %774 = vmatpush.msrb.mxu0 %v586_v0 }
  0x56   : > { %775 = vmatpush.msrb.mxu0 %v585_v9 }
  0x6f   : > { %v1458_v47 = vpop.permute.xlu2 %1066 }
  0x70   : > { %v1069_v15 = vunpack.i.h.bf16 %v1458_v47  ;;  %v1068_v38 = vunpack.i.l.bf16 %v1458_v47 }
  0x72   : > { %v521_v24 = vsel %vm276_vm0, %v957_v18, %v1069_v15  ;;  %v513_v45 = vsel %vm276_vm0, %v317_v39, %v1068_v38 }
  0x77   : > { %v1502_v2 = vpop.permute.xlu2 %1071 }
  0x78   : > { %v1073_v16 = vunpack.i.l.bf16 %v1502_v2  ;;  %v1074_v49 = vunpack.i.h.bf16 %v1502_v2  ;;  %v321_v2 = vld [vmem:[%s1184_s26 + $0x41] sm:$0xff] }
  0x7a   : > { %v507_v25 = vsel %vm276_vm0, %v302_v20, %v1073_v16 }
  0x7f   : > { %v1526_v21 = vpop.permute.xlu2 %1086 }
  0x80   : > { %v1088_v26 = vunpack.i.l.bf16 %v1526_v21 }
  0x82   : > { %v392_v46 = vpop.permute.xlu0 %391  ;;  %v530_v31 = vsel %vm276_vm0, %v302_v20, %v1088_v26  ;;  %v323_v20 = vld [vmem:[%s1184_s26 + $0x61] sm:$0xff] }
  0x83   : > { %v508_v51 = vsel %vm276_vm0, %v1444_v41, %v392_v46 }
  0x84   : > { %662 = vmatmul.f32.vlgmr.msra.gmra.mxu2 %v508_v51 }
  0x85   : > { %v1475_v52 = vpop.permute.xlu1 %1056 }
  0x86   : > { %v1058_v54 = vunpack.i.l.bf16 %v1475_v52  ;;  %v1059_v27 = vunpack.i.h.bf16 %v1475_v52  ;;  %v514_v52 = vsel %vm276_vm0, %v318_v37, %v1074_v49  ;;  %v1605_v49 = vld [vmem:[%s1638_s3] ss:$0 sm:$0xff] }
  0x87   : > { %v1547_v44 = vpop.permute.xlu2 %1101 }
  0x88   : > { %v505_v59 = vsel %vm276_vm0, %v300_v53, %v1058_v54  ;;  %v511_v32 = vsel %vm276_vm0, %v306_v28, %v1059_v27  ;;  %v1103_v47 = vunpack.i.l.bf16 %v1547_v44 }
  0x89   : > { %653 = vmatmul.f32.vlgmr.msra.gmra.mxu1 %v505_v59 }
  0x8a   : > { %v1052_v62 = vpop.permute.xlu0 %1051  ;;  %v532_v51 = vsel %vm276_vm0, %v1497_v63, %v1103_v47 }
  0x8b   : > { %v1053_v1 = vunpack.i.l.bf16 %v1052_v62  ;;  %v1054_v13 = vunpack.i.h.bf16 %v1052_v62 }
  0x8d   : > { %v509_v3 = vsel %vm276_vm0, %v1497_v63, %v1053_v1  ;;  %v1062_v4 = vpop.permute.xlu1 %1061  ;;  %v510_v22 = vsel %vm276_vm0, %v1520_v14, %v1054_v13 }
  0x8e   : > { %665 = vmatmul.f32.gmra.mxu2 %v509_v3  ;;  %v1064_v7 = vunpack.i.h.bf16 %v1062_v4  ;;  %v1063_v8 = vunpack.i.l.bf16 %v1062_v4  ;;  %v1089_v3 = vunpack.i.h.bf16 %v1526_v21 }
  0x8f   : > { %v1117_v63 = vpop.permute.xlu2 %1116 }
  0x90   : > { %v512_v11 = vsel %vm276_vm0, %v1507_v5, %v1063_v8  ;;  %v506_v12 = vsel %vm276_vm0, %v301_v6, %v1064_v7  ;;  %v1118_v1 = vunpack.i.l.bf16 %v1117_v63  ;;  %v516_v9 = vsel %vm276_vm0, %v320_v58, %v1089_v3 }
  0x91   : > { %674 = vmatmul.f32.vlgmr.msra.gmra.mxu3 %v512_v11  ;;  %656 = vmatmul.f32.gmra.mxu1 %v506_v12 }
  0x92   : > { %v1077_v17 = vpop.permute.xlu0 %1076  ;;  %v534_v7 = vsel %vm276_vm0, %v306_v28, %v1118_v1 }
  0x93   : > { %v1079_v19 = vunpack.i.h.bf16 %v1077_v17  ;;  %v1078_v29 = vunpack.i.l.bf16 %v1077_v17  ;;  %v963_v17 = vld [vmem:[%s1184_s26 + $0x210] sm:$0xff] }
  0x95   : > { %v529_v23 = vsel %vm276_vm0, %v301_v6, %v1079_v19  ;;  %v522_v33 = vsel %vm276_vm0, %v958_v30, %v1078_v29  ;;  %v1082_v35 = vpop.permute.xlu1 %1081  ;;  %v962_v6 = vld [vmem:[%s1184_s26 + $0x200] sm:$0xff]  ;;  %v324_v29 = vld [vmem:[%s1184_s26 + $0x71] sm:$0xff] }
  0x96   : > { %668 = vmatmul.f32.gmra.mxu2 %v510_v22  ;;  %776 = vmatmul.f32.vlgmr.msrb.gmra.mxu0 %v529_v23  ;;  %v1084_v40 = vunpack.i.h.bf16 %v1082_v35  ;;  %v1083_v55 = vunpack.i.l.bf16 %v1082_v35  ;;  %v980_v22 = vld [vmem:[%s1184_s26 + $0x80] sm:$0xff]  ;;  %v1104_v23 = vunpack.i.h.bf16 %v1547_v44 }
  0x98   : > { %v523_v46 = vsel %vm276_vm0, %v959_v42, %v1084_v40  ;;  %v515_v60 = vsel %vm276_vm0, %v319_v48, %v1083_v55 }
  0x99   : > { %735 = vmatmul.f32.vlgmr.msrb.gmra.mxu3 %v521_v24  ;;  %659 = vmatmul.f32.gmra.mxu1 %v507_v25  ;;  %v964_v25 = vld [vmem:[%s1184_s26 + $0x220] sm:$0xff] }
  0x9a   : > { %v1092_v34 = vpop.permute.xlu0 %1091 }
  0x9b   : > { %v1094_v36 = vunpack.i.h.bf16 %v1092_v34  ;;  %v1093_v50 = vunpack.i.l.bf16 %v1092_v34  ;;  %v275_v34 = vld [vmem:[%s1640_s5] sm:$0x1] }
  0x9d   : > { %v531_v43 = vsel %vm276_vm0, %v1444_v41, %v1094_v36  ;;  %v960_v41 = vld [vmem:[%s1184_s26 + $0x1e0] sm:$0xff]  ;;  %v1097_v56 = vpop.permute.xlu1 %1096 }
  0x9e   : > { %671 = vmatmul.f32.gmra.mxu2 %v511_v32  ;;  %779 = vmatmul.f32.gmra.mxu0 %v530_v31  ;;  %v524_v53 = vsel %vm276_vm0, %v960_v41, %v1093_v50  ;;  %v1099_v59 = vunpack.i.h.bf16 %v1097_v56  ;;  %v1098_v11 = vunpack.i.l.bf16 %v1097_v56  ;;  %v996_v31 = vld [vmem:[%s1184_s26 + $0x81] sm:$0xff]  ;;  %v1119_v32 = vunpack.i.h.bf16 %v1117_v63 }
  0xa0   : > { %v525_v0 = vsel %vm276_vm0, %v961_v61, %v1099_v59  ;;  %v517_v16 = vsel %vm276_vm0, %v321_v2, %v1098_v11 }
  0xa1   : > { %738 = vmatmul.f32.gmra.mxu3 %v522_v33  ;;  %997 = vmatmul.msk.f32.vlgmr.msrb.gmra.mxu1 %vm276_vm0, %v318_v37  ;;  %v520_v33 = vsel %vm276_vm0, %v324_v29, %v1119_v32 }
  0xa2   : > { %v1107_v54 = vpop.permute.xlu0 %1106 }
  0xa3   : > { %v1109_v57 = vunpack.i.h.bf16 %v1107_v54  ;;  %v1108_v4 = vunpack.i.l.bf16 %v1107_v54 }
  0xa5   : > { %v533_v62 = vsel %vm276_vm0, %v1520_v14, %v1109_v57  ;;  %v526_v10 = vsel %vm276_vm0, %v962_v6, %v1108_v4  ;;  %v1112_v12 = vpop.permute.xlu1 %1111  ;;  %v322_v14 = vld [vmem:[%s1184_s26 + $0x51] sm:$0xff] }
  0xa6   : > { %694 = vmatmul.f32.vlgmr.msrb.gmra.mxu2 %v513_v45  ;;  %782 = vmatmul.f32.gmra.mxu0 %v531_v43  ;;  %v1114_v15 = vunpack.i.h.bf16 %v1112_v12  ;;  %v1113_v28 = vunpack.i.l.bf16 %v1112_v12 }
  0xa8   : > { %v527_v19 = vsel %vm276_vm0, %v963_v17, %v1114_v15  ;;  %v519_v30 = vsel %vm276_vm0, %v323_v20, %v1113_v28 }
  0xa9   : > { %741 = vmatmul.f32.gmra.mxu3 %v523_v46  ;;  %998 = vmatmul.msk.f32.gmra.mxu1 %vm276_vm0, %v319_v48 }
  0xaa   : > { %v1122_v8 = vpop.permute.xlu0 %1121 }
  0xab   : > { %v1124_v13 = vunpack.i.h.bf16 %v1122_v8  ;;  %v1123_v24 = vunpack.i.l.bf16 %v1122_v8 }
  0xad   : > { %v535_v18 = vsel %vm276_vm0, %v1507_v5, %v1124_v13  ;;  %v496_v21 = vpop.permute.xlu1 %495  ;;  %v518_v5 = vsel %vm276_vm0, %v322_v14, %v1104_v23  ;;  %v528_v27 = vsel %vm276_vm0, %v964_v25, %v1123_v24 }
  0xae   : > { %697 = vmatmul.f32.gmra.mxu2 %v514_v52  ;;  %785 = vmatmul.f32.gmra.mxu0 %v532_v51  ;;  %v536_v26 = vsel %vm276_vm0, %v980_v22, %v496_v21 }
  0xb1   : > { %744 = vmatmul.f32.gmra.mxu3 %v524_v53  ;;  %999 = vmatmul.msk.f32.gmra.mxu1 %vm276_vm0, %v320_v58 }
  0xb6   : > { %700 = vmatmul.f32.gmra.mxu2 %v515_v60  ;;  %788 = vmatmul.f32.gmra.mxu0 %v533_v62 }
  0xb9   : > { %747 = vmatmul.f32.gmra.mxu3 %v525_v0  ;;  %1000 = vmatmul.msk.f32.gmra.mxu1 %vm276_vm0, %v321_v2 }
  0xbe   : > { %703 = vmatmul.f32.gmra.mxu2 %v516_v9  ;;  %791 = vmatmul.f32.gmra.mxu0 %v534_v7 }
  0xc0   : > { %v297_v35 = vpop.f32.mrf.mxu0 }
  0xc1   : > { %750 = vmatmul.f32.gmra.mxu3 %v526_v10  ;;  %1001 = vmatmul.msk.f32.gmra.mxu1 %vm276_vm0, %v322_v14  ;;  %v298_v37 = vadd.f32 %v297_v35, %v275_v34 }
  0xc3   : > { %850 = vst [vmem:[#allocation2 + $0x7] sm:$0x1] %v298_v37 }
  0xc6   : > { %706 = vmatmul.f32.gmra.mxu2 %v517_v16  ;;  %794 = vmatmul.f32.gmra.mxu0 %v535_v18 }
  0xc9   : > { %753 = vmatmul.f32.gmra.mxu3 %v527_v19  ;;  %1002 = vmatmul.msk.f32.gmra.mxu1 %vm276_vm0, %v323_v20 }
  0xce   : > { %709 = vmatmul.f32.gmra.mxu2 %v518_v5  ;;  %797 = vmatmul.f32.gmra.mxu0 %v536_v26 }
  0xd1   : > { %756 = vmatmul.f32.gmra.mxu3 %v528_v27  ;;  %1003 = vmatmul.msk.f32.gmra.mxu1 %vm276_vm0, %v324_v29 }
  0xd6   : > { %712 = vmatmul.f32.gmra.mxu2 %v519_v30 }
  0xd9   : > { %1004 = vmatmul.msk.f32.gmra.mxu1 %vm276_vm0, %v996_v31 }
  0xde   : > { %715 = vmatmul.f32.gmra.mxu2 %v520_v33 }
 0x106   : > { %v654_v36 = vpop.f32.mrf.mxu1 }
 0x107   : > { %v663_v38 = vpop.f32.mrf.mxu2  ;;  %v655_v51 = vadd.f32 %v1605_v49, %v654_v36 }
 0x108   : > { %v664_v13 = vadd.f32 %v1605_v49, %v663_v38 }
 0x10e   : > { %v657_v39 = vpop.f32.mrf.mxu1 }
 0x10f   : > { %v658_v57 = vadd.f32 %v1605_v49, %v657_v39 }
 0x111   : > { %v666_v40 = vpop.f32.mrf.mxu2 }
 0x112   : > { %v667_v23 = vadd.f32 %v1605_v49, %v666_v40 }
 0x113   : > { %v777_v45 = vpop.f32.mrf.mxu0 }
 0x114   : > { %v1598_v42 = vpop.f32.mrf.mxu3 }
 0x116   : > { %v660_v43 = vpop.f32.mrf.mxu1 }
 0x117   : > { %v661_v2 = vadd.f32 %v1605_v49, %v660_v43 }
 0x119   : > { %v669_v44 = vpop.f32.mrf.mxu2 }
 0x11a   : > { %v670_v31 = vadd.f32 %v1605_v49, %v669_v44 }
 0x11b   : > { %v780_v50 = vpop.f32.mrf.mxu0 }
 0x11c   : > { %v736_v46 = vpop.f32.mrf.mxu3 }
 0x11e   : > { %v818_v47 = vpop.f32.mrf.mxu1 }
 0x121   : > { %v1600_v48 = vpop.f32.mrf.mxu2 }
 0x122   : > { %v673_v39 = vadd.f32 %v1605_v49, %v1600_v48 }
 0x123   : > { %v783_v59 = vpop.f32.mrf.mxu0 }
 0x124   : > { %v739_v41 = vpop.f32.mrf.mxu3 }
 0x126   : > { %v821_v53 = vpop.f32.mrf.mxu1 }
 0x129   : > { %v695_v52 = vpop.f32.mrf.mxu2 }
 0x12a   : > { %v696_v54 = vadd.f32 %v695_v52, %v655_v51  ;;  %v676_v52 = vadd.f32 %v1605_v49, %v1598_v42 }
 0x12b   : > { %v786_v8 = vpop.f32.mrf.mxu0 }
 0x12c   : > { %v737_v55 = vadd.f32 %v736_v46, %v696_v54  ;;  %v742_v61 = vpop.f32.mrf.mxu3 }
 0x12e   : > { %v778_v56 = vadd.f32 %v777_v45, %v737_v55  ;;  %v824_v63 = vpop.f32.mrf.mxu1 }
 0x130   : > { %v819_v58 = vadd.f32 %v818_v47, %v778_v56 }
 0x131   : > { %v698_v60 = vpop.f32.mrf.mxu2 }
 0x132   : > { %842 = vst [vmem:[#allocation2 + $0x8] sm:$0xff] %v819_v58  ;;  %v699_v62 = vadd.f32 %v698_v60, %v658_v57 }
 0x133   : > { %v789_v19 = vpop.f32.mrf.mxu0 }
 0x134   : > { %v740_v0 = vadd.f32 %v739_v41, %v699_v62  ;;  %v745_v9 = vpop.f32.mrf.mxu3 }
 0x136   : > { %v781_v1 = vadd.f32 %v780_v50, %v740_v0  ;;  %v827_v11 = vpop.f32.mrf.mxu1 }
 0x138   : > { %v822_v3 = vadd.f32 %v821_v53, %v781_v1 }
 0x139   : > { %v851_v4 = vld [vmem:[#allocation2 + $0x7] sm:$0xff]  ;;  %v701_v6 = vpop.f32.mrf.mxu2 }
 0x13a   : > { %860 = vst [vmem:[%s1613_s30] sm:$0xff] %v851_v4  ;;  %v702_v7 = vadd.f32 %v701_v6, %v661_v2 }
 0x13b   : > { %843 = vst [vmem:[#allocation2 + $0x10] sm:$0xff] %v822_v3  ;;  %v792_v29 = vpop.f32.mrf.mxu0 }
 0x13c   : > { %v743_v10 = vadd.f32 %v742_v61, %v702_v7  ;;  %v748_v20 = vpop.f32.mrf.mxu3 }
 0x13e   : > { %v784_v12 = vadd.f32 %v783_v59, %v743_v10  ;;  %v830_v22 = vpop.f32.mrf.mxu1 }
 0x140   : > { %v825_v14 = vadd.f32 %v824_v63, %v784_v12 }
 0x141   : > { %v704_v15 = vpop.f32.mrf.mxu2 }
 0x142   : > { %v852_v16 = vld [vmem:[#allocation2 + $0xf] sm:$0xff]  ;;  %844 = vst [vmem:[#allocation2 + $0x18] sm:$0xff] %v825_v14  ;;  %v705_v17 = vadd.f32 %v704_v15, %v664_v13 }
 0x143   : > { %861 = vst [vmem:[%s1613_s30 + $0x8] sm:$0xff] %v852_v16  ;;  %v795_v43 = vpop.f32.mrf.mxu0 }
 0x144   : > { %v746_v18 = vadd.f32 %v745_v9, %v705_v17  ;;  %v751_v30 = vpop.f32.mrf.mxu3 }
 0x146   : > { %v787_v21 = vadd.f32 %v786_v8, %v746_v18  ;;  %v833_v34 = vpop.f32.mrf.mxu1 }
 0x148   : > { %v828_v24 = vadd.f32 %v827_v11, %v787_v21 }
 0x149   : > { %v853_v25 = vld [vmem:[#allocation2 + $0x17] sm:$0xff]  ;;  %v707_v26 = vpop.f32.mrf.mxu2 }
 0x14a   : > { %862 = vst [vmem:[%s1613_s30 + $0x10] sm:$0xff] %v853_v25  ;;  %v708_v5 = vadd.f32 %v707_v26, %v667_v23 }
 0x14b   : > { %845 = vst [vmem:[#allocation2 + $0x20] sm:$0xff] %v828_v24  ;;  %v798_v57 = vpop.f32.mrf.mxu0 }
 0x14c   : > { %v749_v27 = vadd.f32 %v748_v20, %v708_v5  ;;  %v754_v47 = vpop.f32.mrf.mxu3 }
 0x14e   : > { %v790_v28 = vadd.f32 %v789_v19, %v749_v27  ;;  %v836_v50 = vpop.f32.mrf.mxu1 }
 0x150   : > { %v831_v32 = vadd.f32 %v830_v22, %v790_v28 }
 0x151   : > { %v710_v33 = vpop.f32.mrf.mxu2 }
 0x152   : > { %v854_v35 = vld [vmem:[#allocation2 + $0x1f] sm:$0xff]  ;;  %846 = vst [vmem:[#allocation2 + $0x28] sm:$0xff] %v831_v32  ;;  %v711_v36 = vadd.f32 %v710_v33, %v670_v31 }
 0x153   : > { %863 = vst [vmem:[%s1613_s30 + $0x18] sm:$0xff] %v854_v35 }
 0x154   : > { %v752_v37 = vadd.f32 %v751_v30, %v711_v36  ;;  %v757_v48 = vpop.f32.mrf.mxu3 }
 0x156   : > { %v793_v38 = vadd.f32 %v792_v29, %v752_v37  ;;  %v839_v59 = vpop.f32.mrf.mxu1 }
 0x158   : > { %v834_v40 = vadd.f32 %v833_v34, %v793_v38 }
 0x159   : > { %v855_v45 = vld [vmem:[#allocation2 + $0x27] sm:$0xff]  ;;  %v713_v46 = vpop.f32.mrf.mxu2 }
 0x15a   : > { %864 = vst [vmem:[%s1613_s30 + $0x20] sm:$0xff] %v855_v45  ;;  %v714_v44 = vadd.f32 %v713_v46, %v673_v39 }
 0x15b   : > { %847 = vst [vmem:[#allocation2 + $0x30] sm:$0xff] %v834_v40 }
 0x15c   : > { %v755_v41 = vadd.f32 %v754_v47, %v714_v44 }
 0x15e   : > { %v796_v51 = vadd.f32 %v795_v43, %v755_v41 }
 0x160   : > { %v837_v53 = vadd.f32 %v836_v50, %v796_v51 }
 0x161   : > { %v716_v54 = vpop.f32.mrf.mxu2 }
 0x162   : > { %v856_v55 = vld [vmem:[#allocation2 + $0x2f] sm:$0xff]  ;;  %848 = vst [vmem:[#allocation2 + $0x38] sm:$0xff] %v837_v53  ;;  %v717_v56 = vadd.f32 %v716_v54, %v676_v52 }
 0x163   : > { %865 = vst [vmem:[%s1613_s30 + $0x28] sm:$0xff] %v856_v55 }
 0x164   : > { %v758_v58 = vadd.f32 %v757_v48, %v717_v56 }
 0x166   : > { %v799_v60 = vadd.f32 %v798_v57, %v758_v58 }
 0x168   : > { %v840_v61 = vadd.f32 %v839_v59, %v799_v60 }
 0x169   : > { %v857_v62 = vld [vmem:[#allocation2 + $0x37] sm:$0xff] }
 0x16a   : > { %866 = vst [vmem:[%s1613_s30 + $0x30] sm:$0xff] %v857_v62 }
 0x16b   : > { %849 = vst [vmem:[#allocation2 + $0x40] sm:$0xff] %v840_v61 }
 0x172   : > { %v858_v63 = vld [vmem:[#allocation2 + $0x3f] sm:$0xff]  ;;  %v859_v0 = vld [vmem:[#allocation2 + $0x47] sm:$0x1] }
 0x173   : > { %867 = vst [vmem:[%s1613_s30 + $0x38] sm:$0xff] %v858_v63 }
 0x174   : > { %868 = vst [vmem:[%s1613_s30 + $0x40] sm:$0x1] %v859_v0 }
 0x175 PF: > { %s16_s21 = sadd.s32 1, %s1132_s21  }
 0x176   : > { %p13_p4 = scmp.ge.s32.totalorder %s16_s21, 10  }
 0x178   :  { %15 = sbr.rel (!%p13_p4) target bundleno = 1 (0x1), region = 82 }

</bundles_post_ra>
